<compile_context>
chip_gen: v7x
topology: tpu7x:2x2x1
jax: 0.10.0
libtpu: 0.0.40
codegen_flags: <defaults>
</compile_context>

<pallas_src>
import jax
import jax.numpy as jnp
from jax.experimental import pallas as pl
from jax.experimental.pallas import tpu as pltpu


def _round_up(v, m):
    return ((v + m - 1) // m) * m


def residual_loss_kernel(xz_ref, k_ref, w1_ref, b1_ref, coeff_ref,
                         out_ref, acc_ref):
    """One (core, step) tile: fused MLP -> tanh -> analytic du/dx0 -> partial sum.

    Layouts (samples in lanes, tm multiple of 128):
      xz_ref    (D, tm)   packed [x ; Z^T] columns
      k_ref     (1, tm)   0.5 * K (zeros on padded columns)
      w1_ref    (H, D)    first-layer weights (resident)
      b1_ref    (H, 1)    first-layer bias column (resident)
      coeff_ref (1, H)    W2 ⊙ W1[:, 0] row (resident)
      acc_ref   (1, tm)   resident per-lane partial sums (VMEM scratch)
      out_ref   (1, 1, 1) per-core partial total
    """
    step = pl.program_id(1)

    @pl.when(step == 0)
    def _init():
        acc_ref[...] = jnp.zeros_like(acc_ref)

    # h^T = W1 @ [x ; Z^T]  -> (H, tm) on the MXU (concat fused via packing)
    h = jnp.dot(w1_ref[...], xz_ref[...], preferred_element_type=jnp.float32)
    a = jnp.tanh(h + b1_ref[...])                         # EUP, lane-dense
    g = 1.0 - a * a                                       # VPU, lane-dense

    # analytic du/dx0 (transposed): (1, H) @ (H, tm) -> (1, tm) on the MXU
    u_x = jnp.dot(coeff_ref[...], g, preferred_element_type=jnp.float32)

    # per-lane partial sums; 0.5 already folded into k. No per-step reduce.
    acc_ref[...] += k_ref[...] * u_x * u_x

    @pl.when(step == pl.num_programs(1) - 1)
    def _finalize():
        out_ref[...] = jnp.sum(acc_ref[...]).reshape(1, 1, 1)


def classic_primal_residual_loss(x, Z, K, w1, b1, w2, b2, n, M, *, tm=8192):
    """JAX wrapper mirroring classic_primal_resudial.forward(model, x, K, Z, n, M).

    model == 1-hidden-layer tanh MLP parameterized by (w1, b1, w2, b2).
    b2 does not influence du/dx0 and therefore drops out of the loss.
    """
    del b2  # no effect on d u / d x0
    H, D = w1.shape
    two_n = 2 * n
    assert D == 1 + two_n

    xf = jnp.asarray(x, jnp.float32).reshape(M, 1)
    zf = jnp.asarray(Z, jnp.float32).reshape(M, two_n)
    kf = jnp.asarray(K, jnp.float32).reshape(M, 1)

    # Samples-in-lanes packing (one transpose pass in the wrapper; the kernel
    # then streams a single lane-dense (D, tm) slab + a (1, tm) K row per step).
    xz = jnp.concatenate([xf, zf], axis=1).T            # (D, M)
    khalf = (0.5 * kf).T                                 # (1, M)  0.5 folded in

    w1f = jnp.asarray(w1, jnp.float32)                   # (H, D)
    b1c = jnp.asarray(b1, jnp.float32).reshape(H, 1)     # (H, 1)
    w2r = jnp.asarray(w2, jnp.float32).reshape(1, H)     # (1, H)
    coeff = w2r * w1f[:, 0].reshape(1, H)                # (1, H): u_x^T = coeff @ (1-a^2)

    # --- tile sizing: lanes must be multiples of 128 -------------------------
    tm = max(128, 128 * (int(tm) // 128))
    tm = min(tm, _round_up(M, 128))
    num_tiles = (M + tm - 1) // tm
    nc = 2 if num_tiles >= 2 else 1       # v7x: shard M-tiles across 2 cores
    nsteps = (num_tiles + nc - 1) // nc
    m_pad = nc * nsteps * tm

    if m_pad != M:
        pad = m_pad - M
        xz = jnp.pad(xz, ((0, 0), (0, pad)))             # zero columns
        khalf = jnp.pad(khalf, ((0, 0), (0, pad)))       # K == 0 on padding

    partials = pl.pallas_call(
        residual_loss_kernel,
        out_shape=jax.ShapeDtypeStruct((nc, 1, 1), jnp.float32),
        grid_spec=pltpu.PrefetchScalarGridSpec(
            num_scalar_prefetch=0,
            grid=(nc, nsteps),
            in_specs=[
                pl.BlockSpec((D, tm), lambda c, i: (0, c * nsteps + i)),   # xz  (streamed)
                pl.BlockSpec((1, tm), lambda c, i: (0, c * nsteps + i)),   # K/2 (streamed)
                pl.BlockSpec((H, D), lambda c, i: (0, 0)),                 # W1  (resident)
                pl.BlockSpec((H, 1), lambda c, i: (0, 0)),                 # b1  (resident)
                pl.BlockSpec((1, H), lambda c, i: (0, 0)),                 # coeff (resident)
            ],
            out_specs=pl.BlockSpec((1, 1, 1), lambda c, i: (c, 0, 0)),     # per-core partial
            scratch_shapes=[pltpu.VMEM((1, tm), jnp.float32)],             # per-core acc
        ),
        compiler_params=pltpu.CompilerParams(
            dimension_semantics=("parallel", "arbitrary"),
            vmem_limit_bytes=32 * 1024 * 1024),
    )(xz, khalf, w1f, b1c, coeff)

    return jnp.sum(partials) / jnp.float32(M)


def _reference_loss(x, Z, K, w1, b1, w2, b2, n, M):
    """Pure-JAX reference using autodiff (matches the torch.autograd.grad path)."""
    inp = jnp.concatenate([x, Z.reshape(M, 2 * n)], axis=1).astype(jnp.float32)

    def u_fn(z):                                 # (M, D) -> (M, 1)
        return jnp.tanh(z @ w1.T + b1) @ w2.T + b2

    tangent = jnp.zeros_like(inp).at[:, 0].set(1.0)
    _, u_x = jax.jvp(u_fn, (inp,), (tangent,))   # d u / d inp[:, 0]
    k = jnp.asarray(K, jnp.float32).reshape(M, 1)
    return jnp.mean(0.5 * k * u_x ** 2)


if __name__ == "__main__":
    key = jax.random.PRNGKey(0)
    (kx, kz, kk, kw1, kb1, kw2, kb2,
     kx2, kz2, kk2, kx3, kz3, kk3) = jax.random.split(key, 13)

    # Small deterministic problem consistent with the forward signature.
    n = 8                 # truncation number -> stochastic dim 2n = 16
    D = 1 + 2 * n         # MLP input dim = 17
    H = 32                # hidden width

    # Deterministic "model" parameters (1-hidden-layer tanh MLP, scalar output).
    w1 = 0.3 * jax.random.normal(kw1, (H, D), jnp.float32)
    b1 = 0.1 * jax.random.normal(kb1, (H,), jnp.float32)
    w2 = 0.3 * jax.random.normal(kw2, (1, H), jnp.float32)
    b2 = 0.1 * jax.random.normal(kb2, (1,), jnp.float32)

    # --- case 1: tiny batch (single core, single step, heavy padding) --------
    M = 8
    x = jax.random.uniform(kx, (M, 1), jnp.float32)
    Z = jax.random.normal(kz, (M, n, 2), jnp.float32)
    K = 1.0 + 0.5 * jax.random.uniform(kk, (M, 1), jnp.float32)

    loss = jax.block_until_ready(
        classic_primal_residual_loss(x, Z, K, w1, b1, w2, b2, n, M))
    ref = jax.block_until_ready(_reference_loss(x, Z, K, w1, b1, w2, b2, n, M))
    assert jnp.allclose(loss, ref, rtol=2e-5, atol=1e-6), (loss, ref)

    # --- case 2: two-core parallel split, one step per core, ragged tail -----
    M2 = 200
    x2 = jax.random.uniform(kx2, (M2, 1), jnp.float32)
    Z2 = jax.random.normal(kz2, (M2, n, 2), jnp.float32)
    K2 = 1.0 + 0.5 * jax.random.uniform(kk2, (M2, 1), jnp.float32)

    loss2 = jax.block_until_ready(
        classic_primal_residual_loss(x2, Z2, K2, w1, b1, w2, b2, n, M2, tm=128))
    ref2 = jax.block_until_ready(_reference_loss(x2, Z2, K2, w1, b1, w2, b2, n, M2))
    assert jnp.allclose(loss2, ref2, rtol=2e-5, atol=1e-6), (loss2, ref2)

    # --- case 3: two cores x multiple accumulation steps per core ------------
    M3 = 1000
    x3 = jax.random.uniform(kx3, (M3, 1), jnp.float32)
    Z3 = jax.random.normal(kz3, (M3, n, 2), jnp.float32)
    K3 = 1.0 + 0.5 * jax.random.uniform(kk3, (M3, 1), jnp.float32)

    loss3 = jax.block_until_ready(
        classic_primal_residual_loss(x3, Z3, K3, w1, b1, w2, b2, n, M3, tm=256))
    ref3 = jax.block_until_ready(_reference_loss(x3, Z3, K3, w1, b1, w2, b2, n, M3))
    assert jnp.allclose(loss3, ref3, rtol=2e-5, atol=1e-6), (loss3, ref3)

    print("KERNEL_OK")
</pallas_src>

<mosaic_0001>
module attributes {stable_mosaic.version = 11 : i64} {
  func.func @residual_loss_kernel(%arg0: i32, %arg1: i32, %arg2: memref<17x128xf32, #tpu.memory_space<vmem>>, %arg3: memref<1x128xf32, #tpu.memory_space<vmem>>, %arg4: memref<32x17xf32, #tpu.memory_space<vmem>>, %arg5: memref<32x1xf32, #tpu.memory_space<vmem>>, %arg6: memref<1x32xf32, #tpu.memory_space<vmem>>, %arg7: memref<1x1x1xf32, #tpu.memory_space<vmem>>, %arg8: memref<1x128xf32, #tpu.memory_space<vmem>>) attributes {dimension_semantics = [#tpu.dimension_semantics<parallel>, #tpu.dimension_semantics<arbitrary>], iteration_bounds = array<i64: 1, 1>, scalar_prefetch = 0 : i64, scratch_operands = 1 : i64, tpu.core_type = #tpu.core_type<tc>, window_params = [{transform_indices = @transform_0, window_bounds = array<i64: 17, 128>}, {transform_indices = @transform_1, window_bounds = array<i64: 1, 128>}, {pipeline_mode = #tpu.pipeline_mode<synchronous>, transform_indices = @transform_2, window_bounds = array<i64: 32, 17>}, {pipeline_mode = #tpu.pipeline_mode<synchronous>, transform_indices = @transform_3, window_bounds = array<i64: 32, 1>}, {pipeline_mode = #tpu.pipeline_mode<synchronous>, transform_indices = @transform_4, window_bounds = array<i64: 1, 32>}, {transform_indices = @transform_5, window_bounds = array<i64: 1, 1, 1>}]} {
    %c0_i32 = arith.constant 0 : i32
    %0 = arith.cmpi eq, %arg1, %c0_i32 : i32
    %1 = arith.extui %0 : i1 to i32
    %c0_i32_0 = arith.constant 0 : i32
    %2 = arith.cmpi ne, %1, %c0_i32_0 : i32
    scf.if %2 {
      %cst_18 = arith.constant 0.000000e+00 : f32
      %24 = vector.broadcast %cst_18 : f32 to vector<1x128xf32>
      %c0_19 = arith.constant 0 : index
      %c0_20 = arith.constant 0 : index
      %25 = vector.load %arg8[%c0_19, %c0_20] : memref<1x128xf32, #tpu.memory_space<vmem>>, vector<1x128xf32>
      tpu.vector_store %arg8[%c0_19, %c0_20], %24 {strides = array<i32>} : memref<1x128xf32, #tpu.memory_space<vmem>>, vector<1x128xf32>,
    } else {
    }
    %c0 = arith.constant 0 : index
    %c0_1 = arith.constant 0 : index
    %3 = vector.load %arg4[%c0, %c0_1] : memref<32x17xf32, #tpu.memory_space<vmem>>, vector<32x17xf32>
    %c0_2 = arith.constant 0 : index
    %c0_3 = arith.constant 0 : index
    %4 = vector.load %arg2[%c0_2, %c0_3] : memref<17x128xf32, #tpu.memory_space<vmem>>, vector<17x128xf32>
    %cst = arith.constant dense<0.000000e+00> : vector<32x128xf32>
    %5 = tpu.matmul %3, %4, %cst {dimension_numbers = #tpu.dot_dimension_numbers<[1], [0], [0], [1], [0, 0, 1, 1], [], []>} : vector<32x17xf32>, vector<17x128xf32>, vector<32x128xf32> -> vector<32x128xf32>
    %c0_4 = arith.constant 0 : index
    %c0_5 = arith.constant 0 : index
    %6 = vector.load %arg5[%c0_4, %c0_5] : memref<32x1xf32, #tpu.memory_space<vmem>>, vector<32x1xf32>
    %7 = vector.broadcast %6 : vector<32x1xf32> to vector<32x128xf32>
    %8 = arith.addf %5, %7 : vector<32x128xf32>
    %9 = math.tanh %8 : vector<32x128xf32>
    %10 = arith.mulf %9, %9 : vector<32x128xf32>
    %cst_6 = arith.constant 1.000000e+00 : f32
    %11 = vector.broadcast %cst_6 : f32 to vector<32x128xf32>
    %12 = arith.subf %11, %10 : vector<32x128xf32>
    %c0_7 = arith.constant 0 : index
    %c0_8 = arith.constant 0 : index
    %13 = vector.load %arg6[%c0_7, %c0_8] : memref<1x32xf32, #tpu.memory_space<vmem>>, vector<1x32xf32>
    %cst_9 = arith.constant dense<0.000000e+00> : vector<1x128xf32>
    %14 = tpu.matmul %13, %12, %cst_9 {dimension_numbers = #tpu.dot_dimension_numbers<[1], [0], [0], [1], [0, 0, 1, 1], [], []>} : vector<1x32xf32>, vector<32x128xf32>, vector<1x128xf32> -> vector<1x128xf32>
    %c0_10 = arith.constant 0 : index
    %c0_11 = arith.constant 0 : index
    %15 = vector.load %arg8[%c0_10, %c0_11] : memref<1x128xf32, #tpu.memory_space<vmem>>, vector<1x128xf32>
    %c0_12 = arith.constant 0 : index
    %c0_13 = arith.constant 0 : index
    %16 = vector.load %arg3[%c0_12, %c0_13] : memref<1x128xf32, #tpu.memory_space<vmem>>, vector<1x128xf32>
    %17 = arith.mulf %16, %14 : vector<1x128xf32>
    %18 = arith.mulf %17, %14 : vector<1x128xf32>
    %19 = arith.addf %15, %18 : vector<1x128xf32>
    %c0_14 = arith.constant 0 : index
    %c0_15 = arith.constant 0 : index
    %20 = vector.load %arg8[%c0_14, %c0_15] : memref<1x128xf32, #tpu.memory_space<vmem>>, vector<1x128xf32>
    tpu.vector_store %arg8[%c0_14, %c0_15], %19 {strides = array<i32>} : memref<1x128xf32, #tpu.memory_space<vmem>>, vector<1x128xf32>,
    %c0_i32_16 = arith.constant 0 : i32
    %21 = arith.cmpi eq, %arg1, %c0_i32_16 : i32
    %22 = arith.extui %21 : i1 to i32
    %c0_i32_17 = arith.constant 0 : i32
    %23 = arith.cmpi ne, %22, %c0_i32_17 : i32
    scf.if %23 {
      %c0_18 = arith.constant 0 : index
      %c0_19 = arith.constant 0 : index
      %24 = vector.load %arg8[%c0_18, %c0_19] : memref<1x128xf32, #tpu.memory_space<vmem>>, vector<1x128xf32>
      %25 = vector.shape_cast %24 : vector<1x128xf32> to vector<1x1x128xf32>
      %cst_20 = arith.constant dense<0.000000e+00> : vector<1xf32>
      %26 = vector.multi_reduction <add>, %25, %cst_20 [1, 2] : vector<1x1x128xf32> to vector<1xf32>
      %27 = vector.shape_cast %26 : vector<1xf32> to vector<1x1x1xf32>
      %28 = vector.extract %27[0, 0, 0] : f32 from vector<1x1x1xf32>
      %29 = vector.broadcast %28 : f32 to vector<1x1x1xf32>
      %c0_21 = arith.constant 0 : index
      %c0_22 = arith.constant 0 : index
      %c0_23 = arith.constant 0 : index
      %30 = vector.load %arg7[%c0_21, %c0_22, %c0_23] : memref<1x1x1xf32, #tpu.memory_space<vmem>>, vector<1x1x1xf32>
      tpu.vector_store %arg7[%c0_21, %c0_22, %c0_23], %29 {strides = array<i32>} : memref<1x1x1xf32, #tpu.memory_space<vmem>>, vector<1x1x1xf32>,
    } else {
    }
    return
  }
  func.func @transform_0(%arg0: i32, %arg1: i32) -> (i32, i32) {
    %c1_i32 = arith.constant 1 : i32
    %0 = arith.muli %arg0, %c1_i32 : i32
    %1 = arith.addi %0, %arg1 : i32
    %c0_i32 = arith.constant 0 : i32
    %c0_i32_0 = arith.constant 0 : i32
    return %c0_i32, %1 : i32, i32
  }
  func.func @transform_1(%arg0: i32, %arg1: i32) -> (i32, i32) {
    %c1_i32 = arith.constant 1 : i32
    %0 = arith.muli %arg0, %c1_i32 : i32
    %1 = arith.addi %0, %arg1 : i32
    %c0_i32 = arith.constant 0 : i32
    %c0_i32_0 = arith.constant 0 : i32
    return %c0_i32, %1 : i32, i32
  }
  func.func @transform_2(%arg0: i32, %arg1: i32) -> (i32, i32) {
    %c0_i32 = arith.constant 0 : i32
    %c0_i32_0 = arith.constant 0 : i32
    %c0_i32_1 = arith.constant 0 : i32
    return %c0_i32, %c0_i32_0 : i32, i32
  }
  func.func @transform_3(%arg0: i32, %arg1: i32) -> (i32, i32) {
    %c0_i32 = arith.constant 0 : i32
    %c0_i32_0 = arith.constant 0 : i32
    %c0_i32_1 = arith.constant 0 : i32
    return %c0_i32, %c0_i32_0 : i32, i32
  }
  func.func @transform_4(%arg0: i32, %arg1: i32) -> (i32, i32) {
    %c0_i32 = arith.constant 0 : i32
    %c0_i32_0 = arith.constant 0 : i32
    %c0_i32_1 = arith.constant 0 : i32
    return %c0_i32, %c0_i32_0 : i32, i32
  }
  func.func @transform_5(%arg0: i32, %arg1: i32) -> (i32, i32, i32) {
    %c0_i32 = arith.constant 0 : i32
    %c0_i32_0 = arith.constant 0 : i32
    %c0_i32_1 = arith.constant 0 : i32
    return %arg0, %c0_i32, %c0_i32_0 : i32, i32, i32
  }
}

</mosaic_0001>

<bundles_post_ra>
// kernel: tpu_custom_call.1
= control target key start
LH: loop header
LB: loop body
LE: loop exit
PB: predicated region body
PF: predicated region fallthrough
CT: control target
= control target key end

     0   :  { %vm88_vm0 = vcmask 138240   ;;  %vm101_vm1 = vcmask 1040384   ;;  %v415_v5 = vmov 0   ;;  %s508_s0 = inlined_call_operand.vmem [shape: f32[17,128], index: 0, kind: input, shape index: {}]   ;;  %s509_s1 = inlined_call_operand.vmem [shape: f32[1,128], index: 1, kind: input, shape index: {}]   ;;  %s510_s2 = inlined_call_operand.vmem [shape: f32[32,17], index: 2, kind: input, shape index: {}]   ;;  %s511_s3 = inlined_call_operand.vmem [shape: f32[32,1], index: 3, kind: input, shape index: {}]   ;;  %s512_s4 = inlined_call_operand.vmem [shape: f32[1,32], index: 4, kind: input, shape index: {}]   ;;  %s513_s5 = inlined_call_operand.hbm [shape: f32[1,1,1], index: 5, kind: output, shape index: {}]  }
   0x1   :  { %v61_v0 = vld [vmem:[%s508_s0] sm:$0xff]  ;;  %v62_v1 = vld [vmem:[%s508_s0 + $0x8] sm:$0xff]  ;;  %v63_v4 = vld [vmem:[%s508_s0 + $0x10] sm:$0x1]  ;;  %381 = vset.pattern.permute.xlu0 %v415_v5 }
   0x2   :  { %v364_v2 = vpack.c.bf16 %v62_v1, %v61_v0  ;;  %v57_v3 = vld [vmem:[%s510_s2] sm:$0xff]  ;;  %v66_v7 = vld [vmem:[%s511_s3 + $0x10] sm:$0xff] }
   0x3   :  { %347 = vmatprep.mubr.msk.f32.mxu0 %vm88_vm0, %v57_v3  ;;  %v64_v6 = vld [vmem:[%s511_s3] sm:$0xff] }
   0x4   :  { %365 = vmatprep.subr.bf16.mxu0 %v364_v2  ;;  %70 = vperm.xlu0 %381, %v64_v6  }
   0x5   :  { %10 = vsyncpa [#allocation4], 0  ;;  %367 = vmatpush3.bf16.msra.mxu0 %v364_v2  ;;  %382 = vset.pattern.permute.xlu1 %v415_v5  ;;  %v65_v8 = vld [vmem:[%s511_s3 + $0x8] sm:$0xff]  ;;  %v67_v10 = vld [vmem:[%s511_s3 + $0x18] sm:$0xff]  ;;  %v416_v13 = vmov 0.0|0.0   ;;  %v417_v14 = vmov 0.0  }
   0x6   :  { %345 = vmatprep.subr.msk.mxu0 %vm101_vm1, %v63_v4  ;;  %80 = vperm.xlu1 %382, %v66_v7   ;;  %v58_v9 = vld [vmem:[%s510_s2 + $0x8] sm:$0xff]  ;;  %v59_v11 = vld [vmem:[%s510_s2 + $0x10] sm:$0xff]  ;;  %v60_v12 = vld [vmem:[%s510_s2 + $0x18] sm:$0xff]  ;;  %56 = vst [vmem:[#allocation2] sm:$0x1] %v417_v14  ;;  %vm418_vm2 = vmmov 0  }
   0x7   :  { %368 = vmatprep.subr.bf16.mxu1 %v416_v13  ;;  %361 = vmatprep.mubr.msk.f32.mxu1 %vm418_vm2, %v417_v14  ;;  %v202_v41 = vld [vmem:[%s512_s4] sm:$0x1]  ;;  %vm203_vm3 = vcmask 261120   ;;  %vm298_vm4 = vcmask 0  }
   0x8   :  { %75 = vperm.xlu0 %381, %v65_v8   ;;  %v278_v42 = vld [vmem:[%s509_s1] sm:$0x1]  ;;  %s419_s1 = smov [#allocation3]  }
   0x9   :  { %346 = vmatpush3.msk.msra.mxu0 %vm101_vm1, %v63_v4  ;;  %s306_s4 = sshll.u32 %s419_s1, 4  ;;  %s307_s4 = int_to_ptr.vmem [resolvable:$true] %s306_s4 }
   0xa   :  { %348 = vmatmul.mubr.msk.f32.vlgmr.msra.gmra.mrb[0].mxu0 %vm88_vm0, %v58_v9  ;;  %85 = vperm.xlu1 %382, %v67_v10   ;;  %s391_s17 = scalar_lea.vmem %s307_s4, 16  ;;  %s395_s18 = scalar_lea.vmem %s307_s4, 32 }
   0xb   :  { %350 = vmatprep.mubr.msk.f32.mxu0 %vm88_vm0, %v59_v11  ;;  %p392_p0 = scmp.ne.s32.totalorder %s307_s4, %s391_s17  ;;  %p396_p1 = scmp.lt.s32.totalorder %s307_s4, %s307_s4 }
   0xc   :  { %p397_p2 = scmp.lt.s32.totalorder %s395_s18, %s391_s17 }
   0xd   :  { %v277_v46 = vld [vmem:[#allocation2] sm:$0x1] }
   0xe   :  { %351 = vmatmul.mubr.msk.f32.gmra.mrb[2].mxu0 %vm88_vm0, %v60_v12  ;;  %p398_p3 = por %p397_p2, %p396_p1 }
  0x10   :  { %p399_p4 = pnand %p398_p3, %p392_p0 }
  0x83   :  { %v71_v15 = vpop.permute.xlu0 %70 }
  0x85   :  { %v81_v16 = vpop.permute.xlu1 %80 }
  0x87   :  { %v76_v17 = vpop.permute.xlu0 %75 }
  0x89   :  { %v86_v22 = vpop.permute.xlu1 %85 }
  0xdd   :  { %v349_v18 = vpop.f32.mrb[0].mxu0 }
  0xde   :  { %v177_v19 = vadd.f32 %v349_v18, %v76_v17  ;;  %v171_v20 = vpop.f32.mrb[1].mxu0 }
  0xdf   :  { %v172_v21 = vadd.f32 %v171_v20, %v71_v15 }
  0xe0   :  { %383 = vtanh.f32 %v177_v19 }
  0xe1   :  { %385 = vtanh.f32 %v172_v21  ;;  %v352_v23 = vpop.f32.mrb[2].mxu0 }
  0xe2   :  { %v187_v24 = vadd.f32 %v352_v23, %v86_v22  ;;  %v181_v25 = vpop.f32.mrb[3].mxu0 }
  0xe3   :  { %v182_v26 = vadd.f32 %v181_v25, %v81_v16 }
  0xe4   :  { %387 = vtanh.f32 %v187_v24 }
  0xe5   :  { %389 = vtanh.f32 %v182_v26 }
  0xea   :  { %v384_v27 = vpop.eup %383 }
  0xeb   :  { %v386_v28 = vpop.eup %385  ;;  %v195_v29 = vmul.f32 %v384_v27, %v384_v27 }
  0xec   :  { %v194_v30 = vmul.f32 %v386_v28, %v386_v28 }
  0xed   :  { %v199_v31 = vsub.f32 1.0, %v195_v29 }
  0xee   :  { %v388_v32 = vpop.eup %387  ;;  %v198_v33 = vsub.f32 1.0, %v194_v30 }
  0xef   :  { %v390_v34 = vpop.eup %389  ;;  %v197_v35 = vmul.f32 %v388_v32, %v388_v32 }
  0xf0   :  { %v196_v36 = vmul.f32 %v390_v34, %v390_v34  ;;  %v369_v37 = vpack.c.bf16 %v199_v31, %v198_v33 }
  0xf1   :  { %v201_v38 = vsub.f32 1.0, %v197_v35 }
  0xf2   :  { %v200_v39 = vsub.f32 1.0, %v196_v36  ;;  %370 = vmatpush3.bf16.msra.mxu1 %v369_v37 }
  0xf3   :  { %371 = vmatprep.subr.bf16.mxu1 %v416_v13 }
  0xf4   :  { %v372_v40 = vpack.c.bf16 %v201_v38, %v200_v39 }
  0xf6   :  { %373 = vmatpush3.bf16.msra.mxu1 %v372_v40 }
  0xf9   :  { %362 = vmatmul.mubr.msk.f32.vlgmr.msra.gmra.mrb[0].mxu1 %vm203_vm3, %v202_v41 }
 0x1cc   :  { %v273_v43 = vpop.f32.mrb[0].mxu1 }
 0x1cd   :  { %v279_v44 = vmul.f32 %v278_v42, %v273_v43  ;;  %v363_v45 = vpop.f32.mrb[1].mxu1 }
 0x1cf   :  { %v280_v47 = vmul.f32 %v279_v44, %v273_v43 }
 0x1d1   :  { %v281_v48 = vadd.f32 %v280_v47, %v277_v46 }
 0x1d3   :  { %282 = vst [vmem:[#allocation2] sm:$0x1] %v281_v48 }
 0x1da   :  { %v286_v49 = vld [vmem:[#allocation2] sm:$0x1] }
 0x1db   :  { %v287_v50 = vsel %vm101_vm1, %v286_v49, 0.0 }
 0x1dc   :  { %288 = vadd.xlane.f32.xlu0 %v287_v50 }
 0x269   :  { %v289_v51 = vpop.xlane.xlu0 %288 }
 0x26a   :  { %v290_v52 = vrot.slane %v289_v51, 4 }
 0x26c   :  { %v291_v53 = vadd.f32 %v290_v52, %v289_v51 }
 0x26e   :  { %v292_v54 = vrot.slane %v291_v53, 2 }
 0x270   :  { %v293_v55 = vadd.f32 %v292_v54, %v291_v53 }
 0x272   :  { %v294_v56 = vrot.slane %v293_v55, 1 }
 0x274   :  { %v295_v57 = vadd.f32 %v294_v56, %v293_v55 }
 0x276   :  { %374 = vpush %v295_v57 }
 0x2a7   :  { %s375_s16 = spop %374 }
 0x2a8   :  { %v297_v58 = vstv %s375_s16 }
 0x2a9   :  { %299 = vst.msk [vmem:[#allocation3] sm:$0x1] %vm298_vm4, %v297_v58 }
 0x2aa   :  { %402 = shalt.err (!%p399_p4)
}
 0x2ab   :  { %s403_s21 = scalar_lea.hbm %s513_s5, 16 }
 0x2ac   :  { %p404_p5 = scmp.ne.s32.totalorder %s513_s5, %s403_s21  ;;  %p407_p6 = scmp.lt.u32.totalorder %s403_s21, %s513_s5 }
 0x2ae   :  { %p409_p7 = pnand %p407_p6, %p404_p5 }
 0x2b0   :  { %412 = shalt.err (!%p409_p7)
}
 0x2b1   :  { %309 = dma.vmem_to_hbm [thread:$0]  %s307_s4, 16, %s513_s5, [#allocation4]  }
 0x2b2   :  { %413 = dma.done.wait [#allocation4], 16  }
 0x2b3   :  { %414 = vsyncadd [#allocation4], 4294967280 }
 0x2b4   :  { %313 = vsyncpa [#allocation4], 1 }

</bundles_post_ra>
